<compile_context>
chip_gen: v6e
topology: v6e:2x2x1
jax: 0.10.0
libtpu: 0.0.40
codegen_flags: <defaults>
</compile_context>

<pallas_src>
import functools

import jax
import jax.numpy as jnp
from jax.experimental import pallas as pl
from jax.experimental.pallas import tpu as pltpu


def _round_up(a, b):
    return (a + b - 1) // b * b


def _pick_tb(B, tb_max=8):
    """Largest divisor of B that is <= tb_max while keeping >= 2 grid steps
    (so v7x's two TensorCores both get work); falls back to B when needed."""
    for tb in range(min(tb_max, B), 0, -1):
        if B % tb == 0 and B // tb >= 2:
            return tb
    return B


# ---------------------------------------------------------------------------
# Fused AttFlat kernel: one batch-block per grid step.
# ---------------------------------------------------------------------------
def _attflat_kernel(x_ref, mask_ref, *rest, n_glimpses, use_dropout, inv_keep):
    if use_dropout:
        dmask_ref, w1_ref, b1_ref, w2_ref, b2_ref, wm_ref, bm_ref, o_ref = rest
    else:
        w1_ref, b1_ref, w2_ref, b2_ref, wm_ref, bm_ref, o_ref = rest

    tb, s, h = x_ref.shape
    mid = w1_ref.shape[1]
    g = n_glimpses

    xb = x_ref[...]                                       # (TB, S, H) f32
    x2 = xb.reshape(tb * s, h).astype(jnp.bfloat16)       # MXU-native input

    # FC: Linear -> ReLU -> (Dropout).  The MID-wide hidden never leaves VMEM.
    hid = jnp.dot(x2, w1_ref[...], preferred_element_type=jnp.float32)
    hid = jnp.maximum(hid + b1_ref[...], 0.0)             # (TB*S, MID) f32
    if use_dropout:
        keep = dmask_ref[...].reshape(tb * s, mid).astype(jnp.float32)
        hid = hid * keep * inv_keep                       # inverted dropout

    # Glimpse logits: lane-padded matmul, sliced right after the bias add so
    # softmax / pooling / stores only touch the real G columns.
    logits = jnp.dot(hid.astype(jnp.bfloat16), w2_ref[...],
                     preferred_element_type=jnp.float32) + b2_ref[...]
    logits = logits[:, :g].reshape(tb, s, g)              # (TB, S, G)

    # masked_fill(-1e9) + softmax over the sequence axis (dim=1).
    m = mask_ref[...]                                      # (TB, S, 1), 1.0 = masked
    logits = jnp.where(m > 0.5, jnp.float32(-1e9), logits)
    logits = logits - jnp.max(logits, axis=1, keepdims=True)
    p = jnp.exp(logits)
    # NOTE: plain divide (not pl.reciprocal) so the kernel also runs under the
    # interpret backend; the divide is negligible at these sizes.
    att = p / jnp.sum(p, axis=1, keepdims=True)            # (TB, S, G)

    # Attention-weighted pooling, glimpse-major concat (== torch.cat(dim=1)).
    parts = [jnp.sum(att[:, :, gi:gi + 1] * xb, axis=1) for gi in range(g)]
    pooled = parts[0] if g == 1 else jnp.concatenate(parts, axis=-1)  # (TB, G*H)

    # linear_merge.
    out = jnp.dot(pooled.astype(jnp.bfloat16), wm_ref[...],
                  preferred_element_type=jnp.float32) + bm_ref[...]    # (TB, OUTp)
    o_ref[0] = out.astype(o_ref.dtype)


# ---------------------------------------------------------------------------
# Wrapper: full AttFlat forward in a single pallas_call.
# ---------------------------------------------------------------------------
def attflat_forward(x, x_mask, params, *, dropout_r=0.0, deterministic=True,
                    rng=None, tb_max=8):
    """x: (B, S, num_hid) f32; x_mask: (B, 1, 1, S) bool (True = masked)."""
    B, S, H = x.shape
    w1, b1 = params["w1"], params["b1"]          # (H, MID), (MID,)
    w2, b2 = params["w2"], params["b2"]          # (MID, G), (G,)
    wm, bm = params["wm"], params["bm"]          # (G*H, OUT), (OUT,)
    MID = w1.shape[1]
    G = w2.shape[1]
    GH, OUT = wm.shape
    assert GH == G * H

    use_dropout = (dropout_r > 0.0) and (not deterministic)

    # Lane-pad only the tiny glimpse / output dims; cast weights to bf16 once.
    Gp = _round_up(G, 128)
    OUTp = _round_up(OUT, 128)
    w1_16 = w1.astype(jnp.bfloat16)
    b1_2d = b1.reshape(1, MID).astype(jnp.float32)
    w2_16 = jnp.pad(w2, ((0, 0), (0, Gp - G))).astype(jnp.bfloat16)
    b2_2d = jnp.pad(b2, (0, Gp - G)).reshape(1, Gp).astype(jnp.float32)
    wm_16 = jnp.pad(wm, ((0, 0), (0, OUTp - OUT))).astype(jnp.bfloat16)
    bm_2d = jnp.pad(bm, (0, OUTp - OUT)).reshape(1, OUTp).astype(jnp.float32)

    mask_f = x_mask.reshape(B, S, 1).astype(jnp.float32)

    TB = _pick_tb(B, tb_max)
    nb = B // TB

    inputs = [x, mask_f]
    in_specs = [
        pl.BlockSpec((TB, S, H), lambda b: (b, 0, 0)),
        pl.BlockSpec((TB, S, 1), lambda b: (b, 0, 0)),
    ]
    if use_dropout:
        if rng is None:
            rng = jax.random.PRNGKey(0)
        # {0,1} keep-mask generated outside the kernel (portable to interpret
        # mode); the exact 1/keep_p rescale is applied in-kernel in f32.
        dmask = jax.random.bernoulli(rng, 1.0 - dropout_r,
                                     (B, S, MID)).astype(jnp.bfloat16)
        inputs.append(dmask)
        in_specs.append(pl.BlockSpec((TB, S, MID), lambda b: (b, 0, 0)))
    inputs += [w1_16, b1_2d, w2_16, b2_2d, wm_16, bm_2d]
    in_specs += [
        pl.BlockSpec((H, MID), lambda b: (0, 0)),
        pl.BlockSpec((1, MID), lambda b: (0, 0)),
        pl.BlockSpec((MID, Gp), lambda b: (0, 0)),
        pl.BlockSpec((1, Gp), lambda b: (0, 0)),
        pl.BlockSpec((GH, OUTp), lambda b: (0, 0)),
        pl.BlockSpec((1, OUTp), lambda b: (0, 0)),
    ]

    kernel = functools.partial(
        _attflat_kernel, n_glimpses=G, use_dropout=use_dropout,
        inv_keep=float(1.0 / (1.0 - dropout_r)) if use_dropout else 1.0)

    # VMEM budget from the actual (double-buffered) block sizes; capped at
    # 64 MiB so the same config fits v7x's smaller per-core VMEM.
    itemsize = jnp.dtype(x.dtype).itemsize
    blk_bytes = (2 * TB * S * H * itemsize                      # x blocks
                 + 2 * TB * S * 4                               # mask blocks
                 + (2 * TB * S * MID * 2 if use_dropout else 0)  # dropout mask
                 + 2 * (H * MID + MID * Gp + GH * OUTp) * 2      # bf16 weights
                 + 2 * (MID + Gp + OUTp) * 4                     # biases
                 + 2 * TB * OUTp * 4                             # out blocks
                 + TB * S * (MID + Gp + H) * 4)                  # intermediates
    vmem_limit = int(min(64 * 1024 * 1024,
                         max(32 * 1024 * 1024, blk_bytes * 2)))

    flops = 2 * B * S * (H * MID + MID * Gp + G * H) + 2 * B * GH * OUTp
    bytes_accessed = (B * S * H * itemsize + B * S * 4
                      + (B * S * MID * 2 if use_dropout else 0)
                      + (H * MID + MID * Gp + GH * OUTp) * 2
                      + B * OUTp * 4)

    out = pl.pallas_call(
        kernel,
        out_shape=jax.ShapeDtypeStruct((nb, TB, OUTp), jnp.float32),
        grid=(nb,),
        in_specs=in_specs,
        out_specs=pl.BlockSpec((1, TB, OUTp), lambda b: (b, 0, 0)),
        compiler_params=pltpu.CompilerParams(
            dimension_semantics=("parallel",),
            vmem_limit_bytes=vmem_limit),
        cost_estimate=pl.CostEstimate(
            flops=flops, transcendentals=B * S * G,
            bytes_accessed=bytes_accessed),
    )(*inputs)

    return out.reshape(B, OUTp)[:, :OUT]


if __name__ == "__main__":
    # Small shapes consistent with AttFlat: batch=2, seq=8, num_hid=32,
    # FLAT_MLP_SIZE / FLAT_OUT_SIZE = 128 (lane-dense), 1 glimpse.
    B, S = 2, 8
    NUM_HID = 32
    FLAT_MLP_SIZE = 128
    FLAT_GLIMPSES = 1
    FLAT_OUT_SIZE = 128

    key = jax.random.PRNGKey(0)
    kx, k1, k2, k3, k4, k5, k6, kdrop = jax.random.split(key, 8)

    def linear_init(kw, kb, fan_in, fan_out):
        # nn.Linear default init: U(-1/sqrt(fan_in), +1/sqrt(fan_in)); weight
        # stored already transposed to (in, out).
        bound = 1.0 / (fan_in ** 0.5)
        w = jax.random.uniform(kw, (fan_in, fan_out), jnp.float32, -bound, bound)
        b = jax.random.uniform(kb, (fan_out,), jnp.float32, -bound, bound)
        return w, b

    w1, b1 = linear_init(k1, k2, NUM_HID, FLAT_MLP_SIZE)
    w2, b2 = linear_init(k3, k4, FLAT_MLP_SIZE, FLAT_GLIMPSES)
    wm, bm = linear_init(k5, k6, NUM_HID * FLAT_GLIMPSES, FLAT_OUT_SIZE)
    params = dict(w1=w1, b1=b1, w2=w2, b2=b2, wm=wm, bm=bm)

    x = jax.random.normal(kx, (B, S, NUM_HID), jnp.float32)
    x_mask = jnp.zeros((B, 1, 1, S), jnp.bool_).at[1, 0, 0, 6:].set(True)

    # Eval-mode run (dropout off) -> deterministic, checked against pure JAX.
    y = attflat_forward(x, x_mask, params, dropout_r=0.1, deterministic=True)
    y = jax.block_until_ready(y)

    # Pure-JAX reference of AttFlat.forward (eval mode), using the same
    # bf16-input / f32-accumulate matmul numerics as the kernel.
    bf16 = jnp.bfloat16
    mask_bool = x_mask.reshape(B, S, 1)
    h_ref = jnp.maximum(
        jnp.einsum("bsi,io->bso", x.astype(bf16), w1.astype(bf16),
                   preferred_element_type=jnp.float32) + b1, 0.0)
    att_ref = jnp.einsum("bso,og->bsg", h_ref.astype(bf16), w2.astype(bf16),
                         preferred_element_type=jnp.float32) + b2
    att_ref = jnp.where(mask_bool, -1e9, att_ref)
    att_ref = jax.nn.softmax(att_ref, axis=1)
    pooled_ref = jnp.einsum("bsg,bsh->bgh", att_ref, x).reshape(
        B, FLAT_GLIMPSES * NUM_HID)
    y_ref = jnp.dot(pooled_ref.astype(bf16), wm.astype(bf16),
                    preferred_element_type=jnp.float32) + bm

    assert y.shape == (B, FLAT_OUT_SIZE)
    assert jnp.allclose(y, y_ref, atol=2e-2, rtol=2e-2), \
        float(jnp.max(jnp.abs(y - y_ref)))

    # Exercise the training-mode dropout path (DROPOUT_R=0.1).  Randomness
    # comes from jax.random (not torch's RNG), so only shape/finiteness checked.
    # TODO(synk): dropout mask is generated host-side (jax.random) instead of
    # with the in-kernel TPU PRNG so the kernel also runs under interpret mode.
    y_train = attflat_forward(x, x_mask, params, dropout_r=0.1,
                              deterministic=False, rng=kdrop)
    y_train = jax.block_until_ready(y_train)
    assert y_train.shape == (B, FLAT_OUT_SIZE)
    assert bool(jnp.all(jnp.isfinite(y_train)))

    print("KERNEL_OK")
</pallas_src>

<mosaic_0001>
module attributes {stable_mosaic.version = 11 : i64} {
  func.func @_attflat_kernel(%arg0: i32, %arg1: memref<1x8x32xf32, #tpu.memory_space<vmem>>, %arg2: memref<1x8x1xf32, #tpu.memory_space<vmem>>, %arg3: memref<32x128xbf16, #tpu.memory_space<vmem>>, %arg4: memref<1x128xf32, #tpu.memory_space<vmem>>, %arg5: memref<128x128xbf16, #tpu.memory_space<vmem>>, %arg6: memref<1x128xf32, #tpu.memory_space<vmem>>, %arg7: memref<32x128xbf16, #tpu.memory_space<vmem>>, %arg8: memref<1x128xf32, #tpu.memory_space<vmem>>, %arg9: memref<1x1x128xf32, #tpu.memory_space<vmem>>) attributes {dimension_semantics = [#tpu.dimension_semantics<parallel>], iteration_bounds = array<i64: 2>, scalar_prefetch = 0 : i64, scratch_operands = 0 : i64, tpu.core_type = #tpu.core_type<tc>, window_params = [{transform_indices = @transform_0, window_bounds = array<i64: 1, 8, 32>}, {transform_indices = @transform_1, window_bounds = array<i64: 1, 8, 1>}, {pipeline_mode = #tpu.pipeline_mode<synchronous>, transform_indices = @transform_2, window_bounds = array<i64: 32, 128>}, {pipeline_mode = #tpu.pipeline_mode<synchronous>, transform_indices = @transform_3, window_bounds = array<i64: 1, 128>}, {pipeline_mode = #tpu.pipeline_mode<synchronous>, transform_indices = @transform_4, window_bounds = array<i64: 128, 128>}, {pipeline_mode = #tpu.pipeline_mode<synchronous>, transform_indices = @transform_5, window_bounds = array<i64: 1, 128>}, {pipeline_mode = #tpu.pipeline_mode<synchronous>, transform_indices = @transform_6, window_bounds = array<i64: 32, 128>}, {pipeline_mode = #tpu.pipeline_mode<synchronous>, transform_indices = @transform_7, window_bounds = array<i64: 1, 128>}, {transform_indices = @transform_8, window_bounds = array<i64: 1, 1, 128>}]} {
    %c0 = arith.constant 0 : index
    %c0_0 = arith.constant 0 : index
    %c0_1 = arith.constant 0 : index
    %0 = vector.load %arg1[%c0, %c0_0, %c0_1] : memref<1x8x32xf32, #tpu.memory_space<vmem>>, vector<1x8x32xf32>
    %1 = vector.shape_cast %0 : vector<1x8x32xf32> to vector<8x32xf32>
    %2 = arith.truncf %1 : vector<8x32xf32> to vector<8x32xbf16>
    %c0_2 = arith.constant 0 : index
    %c0_3 = arith.constant 0 : index
    %3 = vector.load %arg3[%c0_2, %c0_3] : memref<32x128xbf16, #tpu.memory_space<vmem>>, vector<32x128xbf16>
    %cst = arith.constant dense<0.000000e+00> : vector<8x128xf32>
    %4 = tpu.matmul %2, %3, %cst {dimension_numbers = #tpu.dot_dimension_numbers<[1], [0], [0], [1], [0, 0, 1, 1], [], []>} : vector<8x32xbf16>, vector<32x128xbf16>, vector<8x128xf32> -> vector<8x128xf32>
    %c0_4 = arith.constant 0 : index
    %c0_5 = arith.constant 0 : index
    %5 = vector.load %arg4[%c0_4, %c0_5] : memref<1x128xf32, #tpu.memory_space<vmem>>, vector<1x128xf32>
    %6 = vector.broadcast %5 : vector<1x128xf32> to vector<8x128xf32>
    %7 = arith.addf %4, %6 : vector<8x128xf32>
    %cst_6 = arith.constant 0.000000e+00 : f32
    %8 = vector.broadcast %cst_6 : f32 to vector<8x128xf32>
    %9 = arith.maximumf %7, %8 : vector<8x128xf32>
    %10 = arith.truncf %9 : vector<8x128xf32> to vector<8x128xbf16>
    %c0_7 = arith.constant 0 : index
    %c0_8 = arith.constant 0 : index
    %11 = vector.load %arg5[%c0_7, %c0_8] : memref<128x128xbf16, #tpu.memory_space<vmem>>, vector<128x128xbf16>
    %cst_9 = arith.constant dense<0.000000e+00> : vector<8x128xf32>
    %12 = tpu.matmul %10, %11, %cst_9 {dimension_numbers = #tpu.dot_dimension_numbers<[1], [0], [0], [1], [0, 0, 1, 1], [], []>} : vector<8x128xbf16>, vector<128x128xbf16>, vector<8x128xf32> -> vector<8x128xf32>
    %c0_10 = arith.constant 0 : index
    %c0_11 = arith.constant 0 : index
    %13 = vector.load %arg6[%c0_10, %c0_11] : memref<1x128xf32, #tpu.memory_space<vmem>>, vector<1x128xf32>
    %14 = vector.broadcast %13 : vector<1x128xf32> to vector<8x128xf32>
    %15 = arith.addf %12, %14 : vector<8x128xf32>
    %16 = vector.extract_strided_slice %15 {offsets = [0, 0], sizes = [8, 1], strides = [1, 1]} : vector<8x128xf32> to vector<8x1xf32>
    %17 = vector.shape_cast %16 : vector<8x1xf32> to vector<1x8x1xf32>
    %c0_12 = arith.constant 0 : index
    %c0_13 = arith.constant 0 : index
    %c0_14 = arith.constant 0 : index
    %18 = vector.load %arg2[%c0_12, %c0_13, %c0_14] : memref<1x8x1xf32, #tpu.memory_space<vmem>>, vector<1x8x1xf32>
    %cst_15 = arith.constant 5.000000e-01 : f32
    %19 = vector.broadcast %cst_15 : f32 to vector<1x8x1xf32>
    %20 = arith.cmpf ogt, %18, %19 : vector<1x8x1xf32>
    %cst_16 = arith.constant -1.000000e+09 : f32
    %21 = vector.broadcast %cst_16 : f32 to vector<1x8x1xf32>
    %22 = arith.select %20, %21, %17 : vector<1x8x1xi1>, vector<1x8x1xf32>
    %cst_17 = arith.constant dense<0xFF800000> : vector<1x1xf32>
    %23 = vector.multi_reduction <maximumf>, %22, %cst_17 [1] : vector<1x8x1xf32> to vector<1x1xf32>
    %24 = vector.shape_cast %23 : vector<1x1xf32> to vector<1x1x1xf32>
    %25 = vector.broadcast %24 : vector<1x1x1xf32> to vector<1x8x1xf32>
    %26 = arith.subf %22, %25 : vector<1x8x1xf32>
    %27 = math.exp %26 : vector<1x8x1xf32>
    %cst_18 = arith.constant dense<0.000000e+00> : vector<1x1xf32>
    %28 = vector.multi_reduction <add>, %27, %cst_18 [1] : vector<1x8x1xf32> to vector<1x1xf32>
    %29 = vector.shape_cast %28 : vector<1x1xf32> to vector<1x1x1xf32>
    %30 = vector.broadcast %29 : vector<1x1x1xf32> to vector<1x8x1xf32>
    %31 = arith.divf %27, %30 : vector<1x8x1xf32>
    %32 = vector.broadcast %31 : vector<1x8x1xf32> to vector<1x8x32xf32>
    %33 = arith.mulf %32, %0 : vector<1x8x32xf32>
    %cst_19 = arith.constant dense<0.000000e+00> : vector<1x32xf32>
    %34 = vector.multi_reduction <add>, %33, %cst_19 [1] : vector<1x8x32xf32> to vector<1x32xf32>
    %35 = arith.truncf %34 : vector<1x32xf32> to vector<1x32xbf16>
    %c0_20 = arith.constant 0 : index
    %c0_21 = arith.constant 0 : index
    %36 = vector.load %arg7[%c0_20, %c0_21] : memref<32x128xbf16, #tpu.memory_space<vmem>>, vector<32x128xbf16>
    %cst_22 = arith.constant dense<0.000000e+00> : vector<1x128xf32>
    %37 = tpu.matmul %35, %36, %cst_22 {dimension_numbers = #tpu.dot_dimension_numbers<[1], [0], [0], [1], [0, 0, 1, 1], [], []>} : vector<1x32xbf16>, vector<32x128xbf16>, vector<1x128xf32> -> vector<1x128xf32>
    %c0_23 = arith.constant 0 : index
    %c0_24 = arith.constant 0 : index
    %38 = vector.load %arg8[%c0_23, %c0_24] : memref<1x128xf32, #tpu.memory_space<vmem>>, vector<1x128xf32>
    %39 = arith.addf %37, %38 : vector<1x128xf32>
    %c0_25 = arith.constant 0 : index
    %c0_26 = arith.constant 0 : index
    %c0_27 = arith.constant 0 : index
    %40 = vector.load %arg9[%c0_25, %c0_26, %c0_27] : memref<1x1x128xf32, #tpu.memory_space<vmem>>, vector<1x1x128xf32>
    %41 = vector.shape_cast %40 : vector<1x1x128xf32> to vector<1x128xf32>
    %42 = vector.shape_cast %39 : vector<1x128xf32> to vector<1x1x128xf32>
    tpu.vector_store %arg9[%c0_25, %c0_26, %c0_27], %42 {strides = array<i32>} : memref<1x1x128xf32, #tpu.memory_space<vmem>>, vector<1x1x128xf32>,
    return
  }
  func.func @transform_0(%arg0: i32) -> (i32, i32, i32) {
    %c0_i32 = arith.constant 0 : i32
    %c0_i32_0 = arith.constant 0 : i32
    %c0_i32_1 = arith.constant 0 : i32
    return %arg0, %c0_i32, %c0_i32_0 : i32, i32, i32
  }
  func.func @transform_1(%arg0: i32) -> (i32, i32, i32) {
    %c0_i32 = arith.constant 0 : i32
    %c0_i32_0 = arith.constant 0 : i32
    %c0_i32_1 = arith.constant 0 : i32
    return %arg0, %c0_i32, %c0_i32_0 : i32, i32, i32
  }
  func.func @transform_2(%arg0: i32) -> (i32, i32) {
    %c0_i32 = arith.constant 0 : i32
    %c0_i32_0 = arith.constant 0 : i32
    %c0_i32_1 = arith.constant 0 : i32
    return %c0_i32, %c0_i32_0 : i32, i32
  }
  func.func @transform_3(%arg0: i32) -> (i32, i32) {
    %c0_i32 = arith.constant 0 : i32
    %c0_i32_0 = arith.constant 0 : i32
    %c0_i32_1 = arith.constant 0 : i32
    return %c0_i32, %c0_i32_0 : i32, i32
  }
  func.func @transform_4(%arg0: i32) -> (i32, i32) {
    %c0_i32 = arith.constant 0 : i32
    %c0_i32_0 = arith.constant 0 : i32
    %c0_i32_1 = arith.constant 0 : i32
    return %c0_i32, %c0_i32_0 : i32, i32
  }
  func.func @transform_5(%arg0: i32) -> (i32, i32) {
    %c0_i32 = arith.constant 0 : i32
    %c0_i32_0 = arith.constant 0 : i32
    %c0_i32_1 = arith.constant 0 : i32
    return %c0_i32, %c0_i32_0 : i32, i32
  }
  func.func @transform_6(%arg0: i32) -> (i32, i32) {
    %c0_i32 = arith.constant 0 : i32
    %c0_i32_0 = arith.constant 0 : i32
    %c0_i32_1 = arith.constant 0 : i32
    return %c0_i32, %c0_i32_0 : i32, i32
  }
  func.func @transform_7(%arg0: i32) -> (i32, i32) {
    %c0_i32 = arith.constant 0 : i32
    %c0_i32_0 = arith.constant 0 : i32
    %c0_i32_1 = arith.constant 0 : i32
    return %c0_i32, %c0_i32_0 : i32, i32
  }
  func.func @transform_8(%arg0: i32) -> (i32, i32, i32) {
    %c0_i32 = arith.constant 0 : i32
    %c0_i32_0 = arith.constant 0 : i32
    %c0_i32_1 = arith.constant 0 : i32
    return %arg0, %c0_i32, %c0_i32_0 : i32, i32, i32
  }
}

</mosaic_0001>

<bundles_post_ra>
// kernel: tpu_custom_call.1
= control target key start
LH: loop header
LB: loop body
LE: loop exit
PB: predicated region body
PF: predicated region fallthrough
CT: control target
= control target key end

     0   :  { %13 = vsyncpa [#allocation3], 0  ;;  %s1324_s0 = inlined_call_operand.vmem [shape: f32[2,8,32], index: 0, kind: input, shape index: {}]   ;;  %s1325_s1 = inlined_call_operand.vmem [shape: f32[2,8,1], index: 1, kind: input, shape index: {}]   ;;  %s1326_s2 = inlined_call_operand.hbm [shape: bf16[32,128], index: 2, kind: input, shape index: {}]   ;;  %s1327_s3 = inlined_call_operand.vmem [shape: f32[1,128], index: 3, kind: input, shape index: {}]   ;;  %s1328_s4 = inlined_call_operand.hbm [shape: bf16[128,128], index: 4, kind: input, shape index: {}]   ;;  %s1329_s5 = inlined_call_operand.vmem [shape: f32[1,128], index: 5, kind: input, shape index: {}]   ;;  %s1330_s6 = inlined_call_operand.hbm [shape: bf16[32,128], index: 6, kind: input, shape index: {}]   ;;  %s1331_s7 = inlined_call_operand.vmem [shape: f32[1,128], index: 7, kind: input, shape index: {}]   ;;  %s1332_s8 = inlined_call_operand.hbm [shape: f32[2,1,128], index: 8, kind: output, shape index: {}]  }
   0x1   :  { %14 = vsyncpa [#allocation6], 0 }
   0x2   :  { %15 = vsyncpa [#allocation4], 0 }
   0x3   :  { %17 = vsyncpa [#allocation4 + $0x1], 0  ;;  %s1129_s27 = smov 0   ;;  %s1131_s28 = smov 0  }
   0x4   :  { %s1133_s29 = smov 0   ;;  %s1135_s30 = smov 0  }
   0x5 LB: > { %s1150_s9 = sadd.s32 4294967295, %s1073_s30   ;;  %s753_s10 = sadd.s32 4294967294, %s1073_s30   ;;  %s1073_s30 = sphi %s1135_s30, %s1348_s30   ;;  %s1069_s29 = sphi %s1133_s29, %s1347_s29   ;;  %s1065_s28 = sphi %s1131_s28, %s1346_s28   ;;  %s1061_s27 = sphi %s1129_s27, %s1345_s27  }
   0x6   : > { %s1154_s11 = sadd.s32 1, %s1073_s30   ;;  %s208_s12 = sadd.s32 1, %s1069_s29 }
   0x7   : > { %s205_s13 = ssub.s32 %s1073_s30, %s1154_s11  ;;  %p218_p0 = scmp.ne.s32.totalorder %s1069_s29, %s1065_s28 }
   0x8   : > { %p206_p1 = scmp.eq.s32.totalorder %s205_s13, 0  ;;  %p219_p2 = scmp.eq.s32.totalorder %s1150_s9, 1 }
   0x9   : > { %p224_p3 = scmp.ne.s32.totalorder %s1065_s28, %s1061_s27  ;;  %p225_p4 = scmp.eq.s32.totalorder %s753_s10, 1 }
   0xa   : > { %s1165_s14 = scalar_select %p206_p1, %s1069_s29, %s208_s12  }
   0xb   : > { %p1167_p5 = por %p219_p2, %p218_p0  ;;  %p1171_p6 = por %p225_p4, %p224_p3 }
   0xc   : > { %p754_p7 = scmp.ge.s32.totalorder %s1073_s30, 1  ;;  %p232_p8 = scmp.lt.s32.totalorder %s1073_s30, 3 }
   0xd   : > { %s1335_s15 = scalar_select %p1167_p5, 1, 0 }
   0xe   : > { %s1336_s16 = scalar_select %p1171_p6, 1, 0 }
   0xf   : > { %p1333_p9 = scmp.eq.s32.totalorder %s1150_s9, 0  ;;  %p1178_p10 = pnand %p754_p7, %p232_p8 }
  0x10   : > { %s1075_s18 = smov [#allocation5]   ;;  %s1076_s21 = smov [#allocation2]  }
  0x11   : > { %p849_p11 = pneg %p1178_p10  ;;  %s260_s19 = sshll.u32 %s1075_s18, 4  ;;  %s261_s19 = int_to_ptr.vmem [resolvable:$true] %s260_s19 }
  0x12   : > { %s244_s22 = sshll.u32 %s1076_s21, 4  ;;  %s1077_s23 = smov [#allocation7]   ;;  %s245_s22 = int_to_ptr.vmem [resolvable:$true] %s244_s22 }
  0x13   : > { %p1186_p12 = pnand %p1333_p9, %p849_p11  ;;  %s276_s24 = sshll.u32 %s1077_s23, 4  ;;  %s277_s24 = int_to_ptr.vmem [resolvable:$true] %s276_s24 }
  0x14   : > { %s938_s25 = scalar_lea.vmem %s261_s19, 1024  ;;  %p946_p3 = scmp.lt.s32.totalorder %s261_s19, %s261_s19 }
  0x15   : > { %p929_p13 = pneg %p1186_p12  ;;  %p939_p0 = scmp.ne.s32.totalorder %s261_s19, %s938_s25 }
  0x16   : > { %p947_p4 = scmp.lt.s32.totalorder %s938_s25, %s938_s25 }
  0x17   : > { %p941_p1 = pnand %p939_p0, %p929_p13 }
  0x18   : > { %p948_p7 = por %p947_p4, %p946_p3 }
  0x19   : > { %p942_p2 = pneg %p941_p1 }
  0x1b   : > { %p949_p8 = pnand %p948_p7, %p942_p2 }
  0x1d   : > { %952 = shalt.err (!%p949_p8)
}
  0x1e   : > { %s1078_s26 = smov 64   ;;  %s1079_s10 = smov 4  }
  0x1f   : > { %855 = dma.hbm_to_vmem [thread:$0]  (!%p1186_p12), %s1328_s4, 1024, %s261_s19, [#allocation6], %s1078_s26, %s1078_s26, %s1079_s10  }
  0x20   : > { %s964_s18 = scalar_lea.vmem %s245_s22, 256  ;;  %p972_p9 = scmp.lt.s32.totalorder %s245_s22, %s245_s22 }
  0x21   : > { %p965_p11 = scmp.ne.s32.totalorder %s245_s22, %s964_s18  ;;  %p973_p6 = scmp.lt.s32.totalorder %s964_s18, %s964_s18 }
  0x23   : > { %p967_p0 = pnand %p965_p11, %p929_p13  ;;  %p974_p3 = por %p973_p6, %p972_p9 }
  0x25   : > { %p968_p1 = pneg %p967_p0 }
  0x27   : > { %p975_p2 = pnand %p974_p3, %p968_p1 }
  0x29   : > { %978 = shalt.err (!%p975_p2)
}
  0x2a   : > { %852 = dma.hbm_to_vmem [thread:$0]  (!%p1186_p12), %s1326_s2, 256, %s245_s22, [#allocation3], %s1078_s26, %s1078_s26, %s1079_s10  }
  0x2b   : > { %s990_s19 = scalar_lea.vmem %s277_s24, 256  ;;  %p998_p11 = scmp.lt.s32.totalorder %s277_s24, %s277_s24 }
  0x2c   : > { %p991_p4 = scmp.ne.s32.totalorder %s277_s24, %s990_s19  ;;  %p999_p0 = scmp.lt.s32.totalorder %s990_s19, %s990_s19 }
  0x2e   : > { %p993_p7 = pnand %p991_p4, %p929_p13  ;;  %p1000_p5 = por %p999_p0, %p998_p11 }
  0x30   : > { %p994_p8 = pneg %p993_p7 }
  0x32   : > { %p1001_p6 = pnand %p1000_p5, %p994_p8 }
  0x34   : > { %1004 = shalt.err (!%p1001_p6)
}
  0x35   : > { %858 = dma.hbm_to_vmem [thread:$0]  (!%p1186_p12), %s1330_s6, 256, %s277_s24, [#allocation6], %s1078_s26, %s1078_s26, %s1079_s10  }
  0x36   : > { %309 = sbr.rel (%p1178_p10) target bundleno = 878 (0x36e), region = 52  ;;  %p1339_p9 = scmp.eq.s32.totalorder (!%p1178_p10), %s1150_s9, 0 }
  0x3b   : > { %1048 = dma.done.wait (%p1339_p9), [#allocation3], 256   ;;  %p1340_p13 = pmov %p1339_p9 }
  0x3c   : > { %p1341_p1 = pmov %p1339_p9 }
  0x3d   : > { %1050 = vsyncadd (%p1340_p13), [#allocation3], 4294967040 }
  0x3e   : > { %1052 = dma.done.wait (%p1341_p1), [#allocation6], 1280   ;;  %p1342_p5 = pmov %p1341_p1 }
  0x3f   : > { %p353_p3 = scmp.lt.s32.totalorder %s1150_s9, 1  ;;  %v1080_v0 = vmov 0.0   ;;  %vm1081_vm0 = vmmov 0   ;;  %v911_v1 = vld [vmem:[#allocation2 + $0x8] sm:$0xff]   ;;  %v912_v2 = vld [vmem:[#allocation2] sm:$0xff]   ;;  %vm387_vm1 = vcmask 261120  }
  0x40   : > { %1054 = vsyncadd (%p1342_p5), [#allocation6], 4294966016  ;;  %799 = vmatprep.subr.bf16.mxu0 %v1080_v0  ;;  %803 = vmatprep.mubr.msk.bf16.mxu0 %vm1081_vm0, %v1080_v0  ;;  %v913_v4 = vld [vmem:[#allocation5 + $0x38] sm:$0xff]   ;;  %v914_v6 = vld [vmem:[#allocation5 + $0x30] sm:$0xff]   ;;  %v1082_v21 = vmov 0   ;;  %vm547_vm3 = vcmask 7168  }
  0x41   : > { %s1231_s17 = scalar_select %p353_p3, %s1150_s9, 1  ;;  %807 = vmatprep.subr.bf16.mxu1 %v1080_v0  ;;  %823 = vmatprep.mubr.msk.bf16.mxu1 %vm1081_vm0, %v1080_v0  ;;  %v915_v7 = vld [vmem:[#allocation5 + $0x28] sm:$0xff]   ;;  %v916_v8 = vld [vmem:[#allocation5 + $0x20] sm:$0xff]   ;;  %v917_v9 = vld [vmem:[#allocation5 + $0x18] sm:$0xff]  }
  0x42   : > { %800 = vmatpush3.bf16.msra.mxu0 %v911_v1  ;;  %808 = vmatpush3.bf16.msra.mxu1 %v913_v4  ;;  %v918_v10 = vld [vmem:[#allocation5 + $0x10] sm:$0xff]   ;;  %v919_v11 = vld [vmem:[#allocation5 + $0x8] sm:$0xff]   ;;  %v920_v12 = vld [vmem:[#allocation5] sm:$0xff]   ;;  %s351_s12 = sand.u32 1, %s1065_s28   ;;  %s781_s22 = sshll.u32 %s1150_s9, 4 }
  0x43   : > { %s763_s20 = sshll.u32 %s1231_s17, 3  ;;  %801 = vmatprep.subr.bf16.mxu0 %v1080_v0  ;;  %809 = vmatprep.subr.bf16.mxu1 %v1080_v0  ;;  %v765_v13 = vld [vmem:[%s1327_s3] ss:$0 sm:$0xff]  ;;  %v921_v49 = vld [vmem:[#allocation7 + $0x8] sm:$0xff]   ;;  %v922_v50 = vld [vmem:[#allocation7] sm:$0xff]   ;;  %s352_s24 = scalar_lea.vmem [#allocation8], %s351_s12 }
  0x44   : > { %s356_s26 = scalar_lea.vmem %s1324_s0, %s763_s20  ;;  %910 = vset.pattern.permute.xlu0 %v1082_v21  ;;  %s360_s23 = scalar_lea.vmem %s1325_s1, %s763_s20  ;;  %v769_v23 = vld [vmem:[%s1329_s5] ss:$0 sm:$0xff] }
  0x45   : > { %v1242_v3 = vld [vmem:[%s356_s26] sm:$0xff]  ;;  %s655_s26 = sshll.u32 %s352_s24, 4  ;;  %s1283_s18 = scalar_lea.hbm %s1332_s8, %s781_s22  ;;  %s1285_s26 = int_to_ptr.vmem [resolvable:$true] %s655_s26 }
  0x46   : > { %v363_v5 = vpack.c.bf16 %v1242_v3, %v1242_v3  ;;  %802 = vmatpush3.bf16.msra.mxu0 %v912_v2  ;;  %810 = vmatpush3.bf16.msra.mxu1 %v914_v6  ;;  %v544_v22 = vld [vmem:[%s360_s23] sm:$0xff]  ;;  %s643_s21 = scalar_lea.sflag [#allocation4], %s351_s12  ;;  %s1005_s23 = scalar_lea.vmem %s1285_s26, 16 }
  0x47   : > { %827 = vmatprep.subr.bf16.mxu0 %v1080_v0  ;;  %811 = vmatprep.subr.bf16.mxu1 %v1080_v0  ;;  %vm545_vm2 = vcmp.gt.f32.partialorder %v544_v22, 0.5  ;;  %v585_v61 = vld [vmem:[%s1331_s7] sm:$0x1]  ;;  %p1006_p10 = scmp.ne.s32.totalorder %s1285_s26, %s1005_s23  ;;  %p1343_p12 = scmp.ne.s32.totalorder %s1335_s15, 0 }
  0x48   : > { %s1083_s9 = smov [#allocation8]  }
  0x49   : > { %804 = vmatmul.mubr.msk.bf16.vlgmr.msra.gmra.mxu0 %vm387_vm1, %v363_v5  ;;  %p1007_p2 = pnand %p1006_p10, %p1343_p12  ;;  %s1009_s19 = sshll.u32 %s1083_s9, 4  ;;  %s1010_s19 = int_to_ptr.vmem [resolvable:$false] %s1009_s19 }
  0x4a   : > { %831 = vmatprep.mubr.msk.bf16.mxu0 %vm1081_vm0, %v1080_v0  ;;  %812 = vmatpush3.bf16.msra.mxu1 %v915_v7  ;;  %s1011_s25 = scalar_lea.vmem %s1010_s19, 32  ;;  %p1012_p7 = scmp.lt.s32.totalorder %s1285_s26, %s1010_s19 }
  0x4b   : > { %813 = vmatprep.subr.bf16.mxu1 %v1080_v0  ;;  %828 = vmatpush3.bf16.msra.mxu0 %v921_v49  ;;  %p1008_p4 = pneg %p1007_p2  ;;  %p1013_p8 = scmp.lt.s32.totalorder %s1011_s25, %s1005_s23 }
  0x4c   : > { %829 = vmatprep.subr.bf16.mxu0 %v1080_v0 }
  0x4d   : > { %p1014_p11 = por %p1013_p8, %p1012_p7 }
  0x4e   : > { %814 = vmatpush3.bf16.msra.mxu1 %v916_v8 }
  0x4f   : > { %815 = vmatprep.subr.bf16.mxu1 %v1080_v0  ;;  %830 = vmatpush3.bf16.msra.mxu0 %v922_v50  ;;  %p1015_p0 = pnand %p1014_p11, %p1008_p4 }
  0x52   : > { %816 = vmatpush3.bf16.msra.mxu1 %v917_v9 }
  0x53   : > { %817 = vmatprep.subr.bf16.mxu1 %v1080_v0 }
  0x56   : > { %818 = vmatpush3.bf16.msra.mxu1 %v918_v10 }
  0x57   : > { %819 = vmatprep.subr.bf16.mxu1 %v1080_v0 }
  0x5a   : > { %820 = vmatpush3.bf16.msra.mxu1 %v919_v11 }
  0x5b   : > { %821 = vmatprep.subr.bf16.mxu1 %v1080_v0 }
  0x5e   : > { %822 = vmatpush3.bf16.msra.mxu1 %v920_v12 }
 0x109   : > { %v425_v14 = vpop.f32.mrf.mxu0 }
 0x10a   : > { %v426_v15 = vadd.f32 %v765_v13, %v425_v14 }
 0x10b   : > { %v805_v16 = vpop.f32.mrf.mxu0 }
 0x10c   : > { %v431_v17 = vmax.f32 %v426_v15, 0.0 }
 0x10d   : > { %v428_v18 = vpop.f32.mrf.mxu0 }
 0x10e   : > { %v432_v19 = vpack.c.bf16 %v431_v17, %v431_v17 }
 0x10f   : > { %v806_v20 = vpop.f32.mrf.mxu0 }
 0x110   : > { %824 = vmatmul.mubr.bf16.vlgmr.msra.gmra.mxu1 %v432_v19 }
 0x1d0   : > { %v538_v24 = vpop.f32.mrf.mxu1 }
 0x1d1   : > { %v539_v25 = vadd.f32 %v769_v23, %v538_v24 }
 0x1d2   : > { %v825_v26 = vpop.f32.mrf.mxu1 }
 0x1d3   : > { %v546_v27 = vsel %vm545_vm2, -1e+09, %v539_v25 }
 0x1d4   : > { %v548_v28 = vsel %vm547_vm3, %v546_v27, -inf  ;;  %v541_v29 = vpop.f32.mrf.mxu1 }
 0x1d5   : > { %v549_v30 = vrot.slane %v548_v28, 4 }
 0x1d6   : > { %v826_v31 = vpop.f32.mrf.mxu1 }
 0x1d7   : > { %v550_v32 = vmax.f32 %v548_v28, %v549_v30 }
 0x1d9   : > { %v551_v33 = vrot.slane %v550_v32, 2 }
 0x1db   : > { %v552_v34 = vmax.f32 %v550_v32, %v551_v33 }
 0x1dd   : > { %v553_v35 = vrot.slane %v552_v34, 1 }
 0x1df   : > { %v554_v36 = vmax.f32 %v552_v34, %v553_v35 }
 0x1e1   : > { %v555_v37 = vsub.f32 %v546_v27, %v554_v36 }
 0x1e3   : > { %v556_v38 = vmul.f32 1.442695, %v555_v37 }
 0x1e5   : > { %923 = vpow2.f32 %v556_v38 }
 0x1f2   : > { %v924_v39 = vpop.eup %923 }
 0x1f3   : > { %v558_v40 = vsel %vm547_vm3, %v924_v39, 0.0 }
 0x1f4   : > { %v559_v41 = vrot.slane %v558_v40, 4 }
 0x1f6   : > { %v560_v42 = vadd.f32 %v559_v41, %v558_v40 }
 0x1f8   : > { %v561_v43 = vrot.slane %v560_v42, 2 }
 0x1fa   : > { %v562_v44 = vadd.f32 %v561_v43, %v560_v42 }
 0x1fc   : > { %v563_v45 = vrot.slane %v562_v44, 1 }
 0x1fe   : > { %v564_v46 = vadd.f32 %v563_v45, %v562_v44 }
 0x200   : > { %925 = vrcp.f32 %v564_v46 }
 0x20d   : > { %v926_v47 = vpop.eup %925 }
 0x20e   : > { %v566_v48 = vmul.f32 %v926_v47, %v924_v39 }
 0x210   : > { %569 = vperm.xlu0 %910, %v566_v48  }
 0x28b   : > { %v570_v51 = vpop.permute.xlu0 %569 }
 0x28c   : > { %v572_v52 = vmul.f32 %v570_v51, %v1242_v3 }
 0x28e   : > { %v573_v53 = vsel %vm387_vm1, %v572_v52, 0.0 }
 0x28f   : > { %v574_v54 = vrot.slane %v573_v53, 4 }
 0x291   : > { %v575_v55 = vadd.f32 %v574_v54, %v573_v53 }
 0x293   : > { %v576_v56 = vrot.slane %v575_v55, 2 }
 0x295   : > { %v577_v57 = vadd.f32 %v576_v56, %v575_v55 }
 0x297   : > { %v578_v58 = vrot.slane %v577_v57, 1 }
 0x299   : > { %v579_v59 = vadd.f32 %v578_v58, %v577_v57 }
 0x29b   : > { %v580_v60 = vpack.c.bf16 %v579_v59, %v579_v59 }
 0x29d   : > { %832 = vmatmul.mubr.msk.bf16.vlgmr.msra.gmra.mxu0 %vm387_vm1, %v580_v60 }
 0x35d   : > { %v635_v62 = vpop.f32.mrf.mxu0 }
 0x35e   : > { %v636_v63 = vadd.f32 %v635_v62, %v585_v61 }
 0x35f   : > { %v833_v0 = vpop.f32.mrf.mxu0 }
 0x360   : > { %641 = vst [vmem:[%s352_s24] sm:$0x1] %v636_v63 }
 0x361   : > { %v638_v1 = vpop.f32.mrf.mxu0 }
 0x362   : > { %1018 = shalt.err (!%p1015_p0)
}
 0x363   : > { %s1019_s17 = scalar_lea.hbm %s1283_s18, 16  ;;  %s1023_s22 = scalar_lea.hbm %s1332_s8, 32 }
 0x364   : > { %p1020_p6 = scmp.ne.s32.totalorder %s1283_s18, %s1019_s17  ;;  %p1024_p1 = scmp.lt.s32.totalorder %s1283_s18, %s1332_s8 }
 0x365   : > { %p1025_p5 = scmp.lt.s32.totalorder %s1023_s22, %s1019_s17 }
 0x366   : > { %p1021_p9 = pnand %p1020_p6, %p1343_p12 }
 0x367   : > { %p1026_p3 = por %p1025_p5, %p1024_p1 }
 0x368   : > { %p1022_p13 = pneg %p1021_p9 }
 0x36a   : > { %p1027_p10 = pnand %p1026_p3, %p1022_p13 }
 0x36c   : > { %1030 = shalt.err (!%p1027_p10)
}
 0x36d   : > { %847 = dma.vmem_to_hbm [thread:$0]  (%p1343_p12), %s1285_s26, 16, %s1283_s18, %s643_s21   ;;  %v834_v2 = vpop.f32.mrf.mxu0 }
 0x36e PF: > { %p869_p2 = scmp.ge.s32.totalorder %s1073_s30, 2  ;;  %s667_s13 = sand.u32 1, %s1061_s27  }
 0x36f   : > { %p1344_p4 = scmp.ne.s32.totalorder %s1336_s16, 0  ;;  %s668_s23 = scalar_lea.sflag [#allocation4], %s667_s13 }
 0x371   : > { %p860_p7 = pnand %p869_p2, %p1344_p4 }
 0x373   : > { %p861_p8 = pneg %p860_p7 }
 0x375   : > { %1056 = dma.done.wait (%p861_p8), %s668_s23, 16  }
 0x376   : > { %1058 = vsyncadd (%p861_p8), %s668_s23, 4294967280  ;;  %p20_p11 = scmp.ge.s32.totalorder %s1154_s11, 4   ;;  %s1345_s27 = smov %s1065_s28 }
 0x377   : > { %s1346_s28 = smov %s1069_s29  ;;  %s1347_s29 = smov %s1165_s14 }
 0x378   : > { %s1348_s30 = smov %s1154_s11  ;;  %22 = sbr.rel (!%p20_p11) target bundleno = 5 (0x5), region = 103 }
 0x37d   :  { %672 = vsyncpa [#allocation3], 1 }
 0x37e   :  { %674 = vsyncpa [#allocation3 + $0x1], 1 }
 0x37f   :  { %675 = vsyncpa [#allocation6], 1 }
 0x380   :  { %676 = vsyncpa [#allocation4], 1 }
 0x381   :  { %678 = vsyncpa [#allocation4 + $0x1], 1 }

</bundles_post_ra>
